<compile_context>
chip_gen: v7x
topology: tpu7x:2x2x1
jax: 0.10.0
libtpu: 0.0.40
codegen_flags: <defaults>
</compile_context>

<pallas_src>
import math

import jax
import jax.numpy as jnp
from jax.experimental import pallas as pl
from jax.experimental.pallas import tpu as pltpu


def decoder_kernel(hp_ref, w1p_ref, b1p_ref, w2p_ref, b2p_ref, o_ref):
    # hp_ref:  (tr, P*node_dim)   packed node-feature tile (P node rows per row)
    # w1p_ref: (P*node_dim, P*node_dim)  block-diagonal kron(I_P, W1)
    # b1p_ref: (1, P*node_dim)           tiled bias
    # w2p_ref: (P*node_dim, P*out_dim)   block-diagonal kron(I_P, W2)
    # b2p_ref: (1, P*out_dim)            tiled bias
    # o_ref:   (tr, P*out_dim)           packed output tile
    h = hp_ref[...]

    # Linear 1: z = h @ W1 + b1  (f32 accumulate on MXU)
    z = jnp.dot(h, w1p_ref[...], preferred_element_type=jnp.float32) + b1p_ref[...]

    # SiLU (sigmoid on EUP, multiply on VPU)
    a = z * jax.nn.sigmoid(z)

    # Linear 2 (no activation): y = a @ W2 + b2
    y = jnp.dot(a, w2p_ref[...], preferred_element_type=jnp.float32) + b2p_ref[...]

    o_ref[...] = y.astype(o_ref.dtype)


def _round_up(x, m):
    return ((x + m - 1) // m) * m


def _cdiv(a, b):
    return (a + b - 1) // b


def _pack_factor(node_dim, out_dim, itemsize, vmem_budget_bytes=8 << 20):
    """Smallest P (power of 2) making P*node_dim and P*out_dim multiples of 128,
    shrunk if the block-diagonal weights would blow the VMEM budget."""
    def need(d):
        return 128 // math.gcd(d, 128)          # power of two

    p = max(need(node_dim), need(out_dim))       # lcm of two powers of two

    def packed_weight_bytes(p_):
        pn, po = p_ * node_dim, p_ * out_dim
        return (pn * pn + pn * po) * itemsize

    while p > 1 and packed_weight_bytes(p) > vmem_budget_bytes:
        p //= 2
    return max(p, 1)


def decoder_forward(h_atm, w1, b1, w2, b2, *, max_rows_per_tile=512):
    """h_atm: [N, node_dim]; w1: [node_dim, node_dim]; b1: [1, node_dim] (or [node_dim]);
    w2: [node_dim, out_dim]; b2: [1, out_dim] (or [out_dim]). Returns [N, out_dim].

    Weights are stored pre-transposed as [in_dim, out_dim] (i.e. PyTorch W.T), so the
    math matches PyTorch's x @ W_pt.T + b exactly."""
    N, node_dim = h_atm.shape
    out_dim = w2.shape[1]
    itemsize = jnp.dtype(h_atm.dtype).itemsize

    P = _pack_factor(node_dim, out_dim, itemsize)
    Pn, Po = P * node_dim, P * out_dim

    # --- choose tiling over packed rows (minimize padding, keep tiles big) ---
    R = _cdiv(N, P)                               # packed rows needed
    num_tiles = max(1, _cdiv(R, max_rows_per_tile))
    tr = _round_up(_cdiv(R, num_tiles), 8)        # packed rows per grid step
    R_pad = tr * num_tiles
    N_pad = R_pad * P

    # --- wrapper-side layout plumbing (row-major reshape = free; no transposes) ---
    h_pad = h_atm if N_pad == N else jnp.pad(h_atm, ((0, N_pad - N), (0, 0)))
    hp = h_pad.reshape(R_pad, Pn)

    eye = jnp.eye(P, dtype=w1.dtype)
    w1p = jnp.kron(eye, w1)                                   # (Pn, Pn)
    w2p = jnp.kron(eye.astype(w2.dtype), w2)                  # (Pn, Po)
    b1p = jnp.tile(b1.reshape(-1), P).reshape(1, Pn)
    b2p = jnp.tile(b2.reshape(-1), P).reshape(1, Po)

    cost = pl.CostEstimate(
        flops=2 * R_pad * (Pn * Pn + Pn * Po),
        transcendentals=R_pad * Pn,
        bytes_accessed=(R_pad * (Pn + Po) + Pn * Pn + Pn * Po + Pn + Po) * itemsize,
    )

    out_p = pl.pallas_call(
        decoder_kernel,
        out_shape=jax.ShapeDtypeStruct((R_pad, Po), h_atm.dtype),
        grid_spec=pltpu.PrefetchScalarGridSpec(
            num_scalar_prefetch=0,
            grid=(R_pad // tr,),
            in_specs=[
                pl.BlockSpec((tr, Pn), lambda i: (i, 0)),     # packed features
                pl.BlockSpec((Pn, Pn), lambda i: (0, 0)),     # kron(I, W1) (resident)
                pl.BlockSpec((1, Pn), lambda i: (0, 0)),      # b1 (tiled)
                pl.BlockSpec((Pn, Po), lambda i: (0, 0)),     # kron(I, W2) (resident)
                pl.BlockSpec((1, Po), lambda i: (0, 0)),      # b2 (tiled)
            ],
            out_specs=pl.BlockSpec((tr, Po), lambda i: (i, 0)),
        ),
        compiler_params=pltpu.CompilerParams(
            dimension_semantics=("parallel",),
        ),
        cost_estimate=cost,
    )(hp, w1p, b1p, w2p, b2p)

    # Undo packing: (R_pad, P*out_dim) -> (N_pad, out_dim) -> (N, out_dim)
    return out_p.reshape(N_pad, out_dim)[:N]


def reference_forward(h_atm, w1, b1, w2, b2):
    z = h_atm.astype(jnp.float32) @ w1 + b1
    a = z * jax.nn.sigmoid(z)
    return (a @ w2 + b2).astype(h_atm.dtype)


if __name__ == "__main__":
    # Small, module-consistent shapes.
    N = 128          # number of atoms/nodes
    node_dim = 32
    out_dim = 16

    key = jax.random.PRNGKey(0)
    k_h, k_w1, k_b1, k_w2, k_b2 = jax.random.split(key, 5)

    h_atm = jax.random.normal(k_h, (N, node_dim), dtype=jnp.float32)

    # PyTorch Linear parameters pre-transposed to [in_dim, out_dim].
    w1 = jax.random.normal(k_w1, (node_dim, node_dim), dtype=jnp.float32) * 0.1
    b1 = jax.random.normal(k_b1, (1, node_dim), dtype=jnp.float32) * 0.01
    w2 = jax.random.normal(k_w2, (node_dim, out_dim), dtype=jnp.float32) * 0.1
    b2 = jax.random.normal(k_b2, (1, out_dim), dtype=jnp.float32) * 0.01

    out = decoder_forward(h_atm, w1, b1, w2, b2)
    out = jax.block_until_ready(out)

    ref = reference_forward(h_atm, w1, b1, w2, b2)
    assert out.shape == (N, out_dim), out.shape
    assert jnp.allclose(out, ref, atol=1e-5, rtol=1e-5), "mismatch vs reference"

    # Also exercise a ragged N (padding path) to cover general atom counts.
    N2 = 300
    h2 = jax.random.normal(k_h, (N2, node_dim), dtype=jnp.float32)
    out2 = jax.block_until_ready(decoder_forward(h2, w1, b1, w2, b2))
    ref2 = reference_forward(h2, w1, b1, w2, b2)
    assert out2.shape == (N2, out_dim)
    assert jnp.allclose(out2, ref2, atol=1e-5, rtol=1e-5), "mismatch vs reference (ragged N)"

    print("KERNEL_OK")
</pallas_src>

<mosaic_0001>
module attributes {stable_mosaic.version = 11 : i64} {
  func.func @decoder_kernel(%arg0: i32, %arg1: memref<16x256xf32, #tpu.memory_space<vmem>>, %arg2: memref<256x256xf32, #tpu.memory_space<vmem>>, %arg3: memref<1x256xf32, #tpu.memory_space<vmem>>, %arg4: memref<256x128xf32, #tpu.memory_space<vmem>>, %arg5: memref<1x128xf32, #tpu.memory_space<vmem>>, %arg6: memref<16x128xf32, #tpu.memory_space<vmem>>) attributes {dimension_semantics = [#tpu.dimension_semantics<parallel>], iteration_bounds = array<i64: 1>, scalar_prefetch = 0 : i64, scratch_operands = 0 : i64, tpu.core_type = #tpu.core_type<tc>, window_params = [{transform_indices = @transform_0, window_bounds = array<i64: 16, 256>}, {pipeline_mode = #tpu.pipeline_mode<synchronous>, transform_indices = @transform_1, window_bounds = array<i64: 256, 256>}, {pipeline_mode = #tpu.pipeline_mode<synchronous>, transform_indices = @transform_2, window_bounds = array<i64: 1, 256>}, {pipeline_mode = #tpu.pipeline_mode<synchronous>, transform_indices = @transform_3, window_bounds = array<i64: 256, 128>}, {pipeline_mode = #tpu.pipeline_mode<synchronous>, transform_indices = @transform_4, window_bounds = array<i64: 1, 128>}, {transform_indices = @transform_5, window_bounds = array<i64: 16, 128>}]} {
    %c0 = arith.constant 0 : index
    %c0_0 = arith.constant 0 : index
    %0 = vector.load %arg1[%c0, %c0_0] : memref<16x256xf32, #tpu.memory_space<vmem>>, vector<16x256xf32>
    %c0_1 = arith.constant 0 : index
    %c0_2 = arith.constant 0 : index
    %1 = vector.load %arg2[%c0_1, %c0_2] : memref<256x256xf32, #tpu.memory_space<vmem>>, vector<256x256xf32>
    %cst = arith.constant dense<0.000000e+00> : vector<16x256xf32>
    %2 = tpu.matmul %0, %1, %cst {dimension_numbers = #tpu.dot_dimension_numbers<[1], [0], [0], [1], [0, 0, 1, 1], [], []>} : vector<16x256xf32>, vector<256x256xf32>, vector<16x256xf32> -> vector<16x256xf32>
    %c0_3 = arith.constant 0 : index
    %c0_4 = arith.constant 0 : index
    %3 = vector.load %arg3[%c0_3, %c0_4] : memref<1x256xf32, #tpu.memory_space<vmem>>, vector<1x256xf32>
    %4 = vector.broadcast %3 : vector<1x256xf32> to vector<16x256xf32>
    %5 = arith.addf %2, %4 : vector<16x256xf32>
    %6 = arith.negf %5 : vector<16x256xf32>
    %7 = math.exp %6 : vector<16x256xf32>
    %cst_5 = arith.constant 1.000000e+00 : f32
    %8 = vector.broadcast %cst_5 : f32 to vector<16x256xf32>
    %9 = arith.addf %8, %7 : vector<16x256xf32>
    %10 = arith.divf %8, %9 : vector<16x256xf32>
    %11 = arith.mulf %5, %10 : vector<16x256xf32>
    %c0_6 = arith.constant 0 : index
    %c0_7 = arith.constant 0 : index
    %12 = vector.load %arg4[%c0_6, %c0_7] : memref<256x128xf32, #tpu.memory_space<vmem>>, vector<256x128xf32>
    %cst_8 = arith.constant dense<0.000000e+00> : vector<16x128xf32>
    %13 = tpu.matmul %11, %12, %cst_8 {dimension_numbers = #tpu.dot_dimension_numbers<[1], [0], [0], [1], [0, 0, 1, 1], [], []>} : vector<16x256xf32>, vector<256x128xf32>, vector<16x128xf32> -> vector<16x128xf32>
    %c0_9 = arith.constant 0 : index
    %c0_10 = arith.constant 0 : index
    %14 = vector.load %arg5[%c0_9, %c0_10] : memref<1x128xf32, #tpu.memory_space<vmem>>, vector<1x128xf32>
    %15 = vector.broadcast %14 : vector<1x128xf32> to vector<16x128xf32>
    %16 = arith.addf %13, %15 : vector<16x128xf32>
    %c0_11 = arith.constant 0 : index
    %c0_12 = arith.constant 0 : index
    %17 = vector.load %arg6[%c0_11, %c0_12] : memref<16x128xf32, #tpu.memory_space<vmem>>, vector<16x128xf32>
    tpu.vector_store %arg6[%c0_11, %c0_12], %16 {strides = array<i32>} : memref<16x128xf32, #tpu.memory_space<vmem>>, vector<16x128xf32>,
    return
  }
  func.func @transform_0(%arg0: i32) -> (i32, i32) {
    %c0_i32 = arith.constant 0 : i32
    %c0_i32_0 = arith.constant 0 : i32
    return %arg0, %c0_i32 : i32, i32
  }
  func.func @transform_1(%arg0: i32) -> (i32, i32) {
    %c0_i32 = arith.constant 0 : i32
    %c0_i32_0 = arith.constant 0 : i32
    %c0_i32_1 = arith.constant 0 : i32
    return %c0_i32, %c0_i32_0 : i32, i32
  }
  func.func @transform_2(%arg0: i32) -> (i32, i32) {
    %c0_i32 = arith.constant 0 : i32
    %c0_i32_0 = arith.constant 0 : i32
    %c0_i32_1 = arith.constant 0 : i32
    return %c0_i32, %c0_i32_0 : i32, i32
  }
  func.func @transform_3(%arg0: i32) -> (i32, i32) {
    %c0_i32 = arith.constant 0 : i32
    %c0_i32_0 = arith.constant 0 : i32
    %c0_i32_1 = arith.constant 0 : i32
    return %c0_i32, %c0_i32_0 : i32, i32
  }
  func.func @transform_4(%arg0: i32) -> (i32, i32) {
    %c0_i32 = arith.constant 0 : i32
    %c0_i32_0 = arith.constant 0 : i32
    %c0_i32_1 = arith.constant 0 : i32
    return %c0_i32, %c0_i32_0 : i32, i32
  }
  func.func @transform_5(%arg0: i32) -> (i32, i32) {
    %c0_i32 = arith.constant 0 : i32
    %c0_i32_0 = arith.constant 0 : i32
    return %arg0, %c0_i32 : i32, i32
  }
}

</mosaic_0001>

<bundles_post_ra>
// kernel: tpu_custom_call.1
= control target key start
LH: loop header
LB: loop body
LE: loop exit
PB: predicated region body
PF: predicated region fallthrough
CT: control target
= control target key end

     0   :  { %10 = vsyncpa [#allocation3], 0  ;;  %s743_s0 = inlined_call_operand.hbm [shape: f32[16,256], index: 0, kind: input, shape index: {}]   ;;  %s744_s1 = inlined_call_operand.hbm [shape: f32[256,256], index: 1, kind: input, shape index: {}]   ;;  %s745_s2 = inlined_call_operand.vmem [shape: f32[1,256], index: 2, kind: input, shape index: {}]   ;;  %s746_s3 = inlined_call_operand.hbm [shape: f32[256,128], index: 3, kind: input, shape index: {}]   ;;  %s747_s4 = inlined_call_operand.vmem [shape: f32[1,128], index: 4, kind: input, shape index: {}]   ;;  %s748_s5 = inlined_call_operand.hbm [shape: f32[16,128], index: 5, kind: output, shape index: {}]  }
   0x1   :  { %11 = vsyncpa [#allocation6], 0 }
   0x2   :  { %12 = vsyncpa [#allocation4], 0  ;;  %s638_s18 = smov [#allocation5]   ;;  %s639_s20 = smov [#allocation2]  }
   0x3   :  { %s30_s19 = sshll.u32 %s638_s18, 4  ;;  %s18_s21 = sshll.u32 %s639_s20, 4  ;;  %s31_s19 = int_to_ptr.vmem [resolvable:$true] %s30_s19  ;;  %s676_s21 = int_to_ptr.vmem [resolvable:$true] %s18_s21 }
   0x4   :  { %s544_s24 = scalar_lea.hbm %s744_s1, 8192 }
   0x5   :  { %p545_p0 = scmp.ne.s32.totalorder %s744_s1, %s544_s24  ;;  %p548_p1 = scmp.lt.u32.totalorder %s544_s24, %s744_s1 }
   0x7   :  { %p550_p2 = pnand %p548_p1, %p545_p0 }
   0x9   :  { %553 = shalt.err (!%p550_p2)
}
   0xa   :  { %s554_s29 = scalar_lea.vmem %s31_s19, 8192  ;;  %p559_p4 = scmp.lt.s32.totalorder %s31_s19, %s31_s19 }
   0xb   :  { %p555_p3 = scmp.ne.s32.totalorder %s31_s19, %s554_s29  ;;  %p560_p5 = scmp.lt.s32.totalorder %s554_s29, %s554_s29 }
   0xd   :  { %p561_p6 = por %p560_p5, %p559_p4 }
   0xf   :  { %p562_p7 = pnand %p561_p6, %p555_p3 }
  0x11   :  { %565 = shalt.err (!%p562_p7)
}
  0x12   :  { %s640_s30 = smov 256   ;;  %s641_s6 = smov 16  }
  0x13   :  { %36 = dma.hbm_to_vmem [thread:$0]  %s744_s1, 8192, %s31_s19, [#allocation6], %s640_s30, %s640_s30, %s641_s6  }
  0x14   :  { %s566_s11 = scalar_lea.hbm %s743_s0, 512 }
  0x15   :  { %p567_p8 = scmp.ne.s32.totalorder %s743_s0, %s566_s11  ;;  %p570_p9 = scmp.lt.u32.totalorder %s566_s11, %s743_s0 }
  0x17   :  { %p572_p10 = pnand %p570_p9, %p567_p8 }
  0x19   :  { %575 = shalt.err (!%p572_p10)
}
  0x1a   :  { %s576_s16 = scalar_lea.vmem %s676_s21, 512  ;;  %p581_p12 = scmp.lt.s32.totalorder %s676_s21, %s676_s21 }
  0x1b   :  { %p577_p11 = scmp.ne.s32.totalorder %s676_s21, %s576_s16  ;;  %p582_p13 = scmp.lt.s32.totalorder %s576_s16, %s576_s16 }
  0x1d   :  { %p583_p0 = por %p582_p13, %p581_p12 }
  0x1f   :  { %p584_p1 = pnand %p583_p0, %p577_p11 }
  0x21   :  { %587 = shalt.err (!%p584_p1)
}
  0x22   :  { %24 = dma.hbm_to_vmem [thread:$0]  %s743_s0, 512, %s676_s21, [#allocation3], %s640_s30, %s640_s30, %s641_s6  }
  0x23   :  { %s642_s18 = smov [#allocation7]   ;;  %s588_s23 = scalar_lea.hbm %s746_s3, 4096 }
  0x24   :  { %s44_s19 = sshll.u32 %s642_s18, 4  ;;  %p589_p2 = scmp.ne.s32.totalorder %s746_s3, %s588_s23  ;;  %s45_s19 = int_to_ptr.vmem [resolvable:$true] %s44_s19 }
  0x25   :  { %p592_p3 = scmp.lt.u32.totalorder %s588_s23, %s746_s3 }
  0x27   :  { %p594_p4 = pnand %p592_p3, %p589_p2 }
  0x29   :  { %597 = shalt.err (!%p594_p4)
}
  0x2a   :  { %s598_s28 = scalar_lea.vmem %s45_s19, 4096  ;;  %p603_p6 = scmp.lt.s32.totalorder %s45_s19, %s45_s19 }
  0x2b   :  { %p599_p5 = scmp.ne.s32.totalorder %s45_s19, %s598_s28  ;;  %p604_p7 = scmp.lt.s32.totalorder %s598_s28, %s598_s28 }
  0x2d   :  { %p605_p8 = por %p604_p7, %p603_p6 }
  0x2f   :  { %p606_p9 = pnand %p605_p8, %p599_p5 }
  0x31   :  { %609 = shalt.err (!%p606_p9)
}
  0x32   :  { %s643_s0 = smov 128   ;;  %s644_s21 = smov 8  }
  0x33   :  { %50 = dma.hbm_to_vmem [thread:$0]  %s746_s3, 4096, %s45_s19, [#allocation6], %s643_s0, %s643_s0, %s644_s21  }
  0x34   :  { %632 = dma.done.wait [#allocation3], 512  }
  0x35   :  { %633 = vsyncadd [#allocation3], 4294966784 }
  0x36   :  { %634 = dma.done.wait [#allocation6], 12288  }
  0x37   :  { %635 = vsyncadd [#allocation6], 4294955008  ;;  %v67_v0 = vld [vmem:[#allocation5 + $0x8] sm:$0xff]  ;;  %v69_v1 = vld [vmem:[#allocation5 + $0x18] sm:$0xff]  ;;  %s645_s8 = smov [#allocation8]  }
  0x38   :  { %v66_v2 = vld [vmem:[#allocation5] sm:$0xff]  ;;  %v424_v3 = vpack.c.bf16 %v69_v1, %v67_v0  ;;  %v68_v4 = vld [vmem:[#allocation5 + $0x10] sm:$0xff]  ;;  %v71_v5 = vld [vmem:[#allocation5 + $0x28] sm:$0xff]  ;;  %s368_s9 = sshll.u32 %s645_s8, 4  ;;  %s369_s9 = int_to_ptr.vmem [resolvable:$true] %s368_s9 }
  0x39   :  { %v73_v6 = vld [vmem:[#allocation5 + $0x38] sm:$0xff]  ;;  %v426_v7 = vpack.c.bf16 %v68_v4, %v66_v2  ;;  %v70_v9 = vld [vmem:[#allocation5 + $0x20] sm:$0xff]  ;;  %v72_v10 = vld [vmem:[#allocation5 + $0x30] sm:$0xff]  ;;  %s610_s10 = scalar_lea.vmem %s369_s9, 256  ;;  %p615_p11 = scmp.lt.s32.totalorder %s369_s9, %s369_s9 }
  0x3a   :  { %v428_v8 = vpack.c.bf16 %v73_v6, %v71_v5  ;;  %v75_v11 = vld [vmem:[#allocation5 + $0x48] sm:$0xff]  ;;  %425 = vmatprep.subr.bf16.mxu0 %v424_v3  ;;  %v77_v12 = vld [vmem:[#allocation5 + $0x58] sm:$0xff]  ;;  %v430_v13 = vpack.c.bf16 %v72_v10, %v70_v9  ;;  %v74_v15 = vld [vmem:[#allocation5 + $0x40] sm:$0xff]  ;;  %p611_p10 = scmp.ne.s32.totalorder %s369_s9, %s610_s10  ;;  %p616_p12 = scmp.lt.s32.totalorder %s610_s10, %s610_s10 }
  0x3b   :  { %427 = vmatpush1.bf16.msra.mxu0 %v426_v7  ;;  %v432_v14 = vpack.c.bf16 %v77_v12, %v75_v11  ;;  %v76_v16 = vld [vmem:[#allocation5 + $0x50] sm:$0xff]  ;;  %v79_v17 = vld [vmem:[#allocation5 + $0x68] sm:$0xff]  ;;  %v81_v18 = vld [vmem:[#allocation5 + $0x78] sm:$0xff] }
  0x3c   :  { %429 = vmatprep.subr.bf16.mxu0 %v428_v8  ;;  %v434_v19 = vpack.c.bf16 %v76_v16, %v74_v15  ;;  %v436_v20 = vpack.c.bf16 %v81_v18, %v79_v17  ;;  %v78_v21 = vld [vmem:[#allocation5 + $0x60] sm:$0xff]  ;;  %v80_v22 = vld [vmem:[#allocation5 + $0x70] sm:$0xff]  ;;  %v83_v23 = vld [vmem:[#allocation5 + $0x88] sm:$0xff]  ;;  %p617_p13 = por %p616_p12, %p615_p11 }
  0x3d   :  { %v85_v24 = vld [vmem:[#allocation5 + $0x98] sm:$0xff]  ;;  %v438_v25 = vpack.c.bf16 %v80_v22, %v78_v21  ;;  %v82_v27 = vld [vmem:[#allocation5 + $0x80] sm:$0xff]  ;;  %v84_v28 = vld [vmem:[#allocation5 + $0x90] sm:$0xff] }
  0x3e   :  { %v440_v26 = vpack.c.bf16 %v85_v24, %v83_v23  ;;  %v87_v29 = vld [vmem:[#allocation5 + $0xa8] sm:$0xff]  ;;  %v89_v30 = vld [vmem:[#allocation5 + $0xb8] sm:$0xff]  ;;  %v442_v31 = vpack.c.bf16 %v84_v28, %v82_v27  ;;  %v86_v33 = vld [vmem:[#allocation5 + $0xa0] sm:$0xff]  ;;  %p618_p0 = pnand %p617_p13, %p611_p10 }
  0x3f   :  { %431 = vmatpush1.bf16.msra.mxu0 %v430_v13  ;;  %v444_v32 = vpack.c.bf16 %v89_v30, %v87_v29  ;;  %v88_v34 = vld [vmem:[#allocation5 + $0xb0] sm:$0xff]  ;;  %v91_v35 = vld [vmem:[#allocation5 + $0xc8] sm:$0xff]  ;;  %v93_v36 = vld [vmem:[#allocation5 + $0xd8] sm:$0xff] }
  0x40   :  { %433 = vmatprep.subr.bf16.mxu0 %v432_v14  ;;  %v446_v37 = vpack.c.bf16 %v88_v34, %v86_v33  ;;  %v448_v38 = vpack.c.bf16 %v93_v36, %v91_v35  ;;  %v90_v39 = vld [vmem:[#allocation5 + $0xc0] sm:$0xff]  ;;  %v92_v40 = vld [vmem:[#allocation5 + $0xd0] sm:$0xff]  ;;  %v63_v41 = vld [vmem:[#allocation2 + $0x8] sm:$0xff] }
  0x41   :  { %v95_v42 = vld [vmem:[#allocation5 + $0xe8] sm:$0xff]  ;;  %v97_v43 = vld [vmem:[#allocation5 + $0xf8] sm:$0xff]  ;;  %206 = vmatprep.mubr.f32.mxu0 %v63_v41  ;;  %v450_v44 = vpack.c.bf16 %v92_v40, %v90_v39  ;;  %v94_v46 = vld [vmem:[#allocation5 + $0xe0] sm:$0xff] }
  0x42   :  { %v452_v45 = vpack.c.bf16 %v97_v43, %v95_v42  ;;  %v96_v47 = vld [vmem:[#allocation5 + $0xf0] sm:$0xff]  ;;  %v99_v48 = vld [vmem:[#allocation5 + $0x108] sm:$0xff]  ;;  %v101_v49 = vld [vmem:[#allocation5 + $0x118] sm:$0xff] }
  0x43   :  { %435 = vmatpush1.bf16.msra.mxu0 %v434_v19  ;;  %v454_v50 = vpack.c.bf16 %v96_v47, %v94_v46  ;;  %v456_v51 = vpack.c.bf16 %v101_v49, %v99_v48  ;;  %v98_v52 = vld [vmem:[#allocation5 + $0x100] sm:$0xff]  ;;  %v100_v53 = vld [vmem:[#allocation5 + $0x110] sm:$0xff]  ;;  %v103_v54 = vld [vmem:[#allocation5 + $0x128] sm:$0xff] }
  0x44   :  { %437 = vmatprep.subr.bf16.mxu0 %v436_v20  ;;  %v105_v55 = vld [vmem:[#allocation5 + $0x138] sm:$0xff]  ;;  %v458_v56 = vpack.c.bf16 %v100_v53, %v98_v52  ;;  %v102_v58 = vld [vmem:[#allocation5 + $0x120] sm:$0xff]  ;;  %v104_v59 = vld [vmem:[#allocation5 + $0x130] sm:$0xff] }
  0x45   :  { %v460_v57 = vpack.c.bf16 %v105_v55, %v103_v54  ;;  %v107_v60 = vld [vmem:[#allocation5 + $0x148] sm:$0xff]  ;;  %v109_v61 = vld [vmem:[#allocation5 + $0x158] sm:$0xff]  ;;  %v462_v62 = vpack.c.bf16 %v104_v59, %v102_v58  ;;  %v106_v0 = vld [vmem:[#allocation5 + $0x140] sm:$0xff] }
  0x46   :  { %v464_v63 = vpack.c.bf16 %v109_v61, %v107_v60  ;;  %v108_v1 = vld [vmem:[#allocation5 + $0x150] sm:$0xff]  ;;  %v111_v2 = vld [vmem:[#allocation5 + $0x168] sm:$0xff]  ;;  %v113_v3 = vld [vmem:[#allocation5 + $0x178] sm:$0xff] }
  0x47   :  { %439 = vmatpush1.bf16.msra.mxu0 %v438_v25  ;;  %v466_v4 = vpack.c.bf16 %v108_v1, %v106_v0  ;;  %v468_v5 = vpack.c.bf16 %v113_v3, %v111_v2  ;;  %v110_v6 = vld [vmem:[#allocation5 + $0x160] sm:$0xff]  ;;  %v112_v7 = vld [vmem:[#allocation5 + $0x170] sm:$0xff]  ;;  %v115_v8 = vld [vmem:[#allocation5 + $0x188] sm:$0xff] }
  0x48   :  { %441 = vmatprep.subr.bf16.mxu0 %v440_v26  ;;  %v117_v9 = vld [vmem:[#allocation5 + $0x198] sm:$0xff]  ;;  %v470_v10 = vpack.c.bf16 %v112_v7, %v110_v6  ;;  %v114_v12 = vld [vmem:[#allocation5 + $0x180] sm:$0xff]  ;;  %v116_v13 = vld [vmem:[#allocation5 + $0x190] sm:$0xff] }
  0x49   :  { %v472_v11 = vpack.c.bf16 %v117_v9, %v115_v8  ;;  %v119_v14 = vld [vmem:[#allocation5 + $0x1a8] sm:$0xff]  ;;  %v121_v15 = vld [vmem:[#allocation5 + $0x1b8] sm:$0xff]  ;;  %v474_v16 = vpack.c.bf16 %v116_v13, %v114_v12  ;;  %v118_v18 = vld [vmem:[#allocation5 + $0x1a0] sm:$0xff] }
  0x4a   :  { %v476_v17 = vpack.c.bf16 %v121_v15, %v119_v14  ;;  %v120_v19 = vld [vmem:[#allocation5 + $0x1b0] sm:$0xff]  ;;  %v123_v20 = vld [vmem:[#allocation5 + $0x1c8] sm:$0xff]  ;;  %v125_v21 = vld [vmem:[#allocation5 + $0x1d8] sm:$0xff] }
  0x4b   :  { %443 = vmatpush1.bf16.msra.mxu0 %v442_v31  ;;  %v478_v22 = vpack.c.bf16 %v120_v19, %v118_v18  ;;  %v480_v23 = vpack.c.bf16 %v125_v21, %v123_v20  ;;  %v122_v24 = vld [vmem:[#allocation5 + $0x1c0] sm:$0xff]  ;;  %v124_v25 = vld [vmem:[#allocation5 + $0x1d0] sm:$0xff]  ;;  %v127_v26 = vld [vmem:[#allocation5 + $0x1e8] sm:$0xff]  ;;  %v132_v20 = vlaneseq }
  0x4c   :  { %445 = vmatprep.subr.bf16.mxu0 %v444_v32  ;;  %v129_v27 = vld [vmem:[#allocation5 + $0x1f8] sm:$0xff]  ;;  %v482_v28 = vpack.c.bf16 %v124_v25, %v122_v24  ;;  %v126_v30 = vld [vmem:[#allocation5 + $0x1e0] sm:$0xff]  ;;  %v128_v31 = vld [vmem:[#allocation5 + $0x1f0] sm:$0xff] }
  0x4d   :  { %v484_v29 = vpack.c.bf16 %v129_v27, %v127_v26  ;;  %v486_v32 = vpack.c.bf16 %v128_v31, %v126_v30  ;;  %v62_v33 = vld [vmem:[#allocation2] sm:$0xff]  ;;  %v65_v34 = vld [vmem:[#allocation2 + $0x18] sm:$0xff]  ;;  %v64_v35 = vld [vmem:[#allocation2 + $0x10] sm:$0xff]  ;;  %v133_v21 = vshrl.u32 %v132_v20, 7 }
  0x4e   :  { %v263_v36 = vld [vmem:[#allocation7 + $0x80] sm:$0xff]  ;;  %v248_v40 = vld [vmem:[#allocation7 + $0x8] sm:$0xff]  ;;  %v265_v42 = vld [vmem:[#allocation7 + $0x90] sm:$0xff] }
  0x4f   :  { %447 = vmatpush1.bf16.msra.mxu0 %v446_v37  ;;  %v264_v37 = vld [vmem:[#allocation7 + $0x88] sm:$0xff]  ;;  %v247_v39 = vld [vmem:[#allocation7] sm:$0xff]  ;;  %v266_v43 = vld [vmem:[#allocation7 + $0x98] sm:$0xff]  ;;  %v138_v24 = vsub.s32 1, %v133_v21 }
  0x50   :  { %449 = vmatprep.subr.bf16.mxu0 %v448_v38  ;;  %v488_v38 = vpack.c.bf16 %v264_v37, %v263_v36  ;;  %v490_v41 = vpack.c.bf16 %v248_v40, %v247_v39  ;;  %v250_v46 = vld [vmem:[#allocation7 + $0x18] sm:$0xff]  ;;  %v267_v48 = vld [vmem:[#allocation7 + $0xa0] sm:$0xff]  ;;  %v268_v49 = vld [vmem:[#allocation7 + $0xa8] sm:$0xff] }
  0x51   :  { %v252_v52 = vld [vmem:[#allocation7 + $0x28] sm:$0xff]  ;;  %v269_v54 = vld [vmem:[#allocation7 + $0xb0] sm:$0xff]  ;;  %v270_v55 = vld [vmem:[#allocation7 + $0xb8] sm:$0xff] }
  0x52   :  { %489 = vmatprep.subr.bf16.mxu1 %v488_v38  ;;  %v254_v58 = vld [vmem:[#allocation7 + $0x38] sm:$0xff]  ;;  %v271_v60 = vld [vmem:[#allocation7 + $0xc0] sm:$0xff]  ;;  %v272_v61 = vld [vmem:[#allocation7 + $0xc8] sm:$0xff] }
  0x53   :  { %451 = vmatpush1.bf16.msra.mxu0 %v450_v44  ;;  %491 = vmatpush3.bf16.msra.mxu1 %v490_v41  ;;  %v492_v44 = vpack.c.bf16 %v266_v43, %v265_v42  ;;  %v256_v0 = vld [vmem:[#allocation7 + $0x48] sm:$0xff]  ;;  %v273_v2 = vld [vmem:[#allocation7 + $0xd0] sm:$0xff]  ;;  %v274_v3 = vld [vmem:[#allocation7 + $0xd8] sm:$0xff] }
  0x54   :  { %453 = vmatprep.subr.bf16.mxu0 %v452_v45  ;;  %v249_v45 = vld [vmem:[#allocation7 + $0x10] sm:$0xff]  ;;  %v258_v6 = vld [vmem:[#allocation7 + $0x58] sm:$0xff]  ;;  %v275_v8 = vld [vmem:[#allocation7 + $0xe0] sm:$0xff] }
  0x55   :  { %v494_v47 = vpack.c.bf16 %v250_v46, %v249_v45  ;;  %493 = vmatprep.subr.bf16.mxu1 %v492_v44  ;;  %v276_v9 = vld [vmem:[#allocation7 + $0xe8] sm:$0xff]  ;;  %v277_v14 = vld [vmem:[#allocation7 + $0xf0] sm:$0xff]  ;;  %v278_v15 = vld [vmem:[#allocation7 + $0xf8] sm:$0xff] }
  0x56   :  { %v260_v12 = vld [vmem:[#allocation7 + $0x68] sm:$0xff]  ;;  %v262_v18 = vld [vmem:[#allocation7 + $0x78] sm:$0xff] }
  0x57   :  { %455 = vmatpush1.bf16.msra.mxu0 %v454_v50  ;;  %495 = vmatpush3.bf16.msra.mxu1 %v494_v47  ;;  %v496_v50 = vpack.c.bf16 %v268_v49, %v267_v48 }
  0x58   :  { %457 = vmatprep.subr.bf16.mxu0 %v456_v51  ;;  %v251_v51 = vld [vmem:[#allocation7 + $0x20] sm:$0xff] }
  0x59   :  { %v498_v53 = vpack.c.bf16 %v252_v52, %v251_v51  ;;  %497 = vmatprep.subr.bf16.mxu1 %v496_v50 }
  0x5b   :  { %459 = vmatpush1.bf16.msra.mxu0 %v458_v56  ;;  %499 = vmatpush3.bf16.msra.mxu1 %v498_v53  ;;  %v500_v56 = vpack.c.bf16 %v270_v55, %v269_v54 }
  0x5c   :  { %461 = vmatprep.subr.bf16.mxu0 %v460_v57  ;;  %v253_v57 = vld [vmem:[#allocation7 + $0x30] sm:$0xff] }
  0x5d   :  { %v502_v59 = vpack.c.bf16 %v254_v58, %v253_v57  ;;  %501 = vmatprep.subr.bf16.mxu1 %v500_v56  ;;  %v385_v56 = vld [vmem:[%s747_s4] ss:$0 sm:$0xff] }
  0x5f   :  { %463 = vmatpush1.bf16.msra.mxu0 %v462_v62  ;;  %503 = vmatpush3.bf16.msra.mxu1 %v502_v59  ;;  %v504_v62 = vpack.c.bf16 %v272_v61, %v271_v60 }
  0x60   :  { %465 = vmatprep.subr.bf16.mxu0 %v464_v63  ;;  %v255_v63 = vld [vmem:[#allocation7 + $0x40] sm:$0xff] }
  0x61   :  { %v506_v1 = vpack.c.bf16 %v256_v0, %v255_v63  ;;  %505 = vmatprep.subr.bf16.mxu1 %v504_v62 }
  0x63   :  { %467 = vmatpush1.bf16.msra.mxu0 %v466_v4  ;;  %507 = vmatpush3.bf16.msra.mxu1 %v506_v1  ;;  %v508_v4 = vpack.c.bf16 %v274_v3, %v273_v2 }
  0x64   :  { %469 = vmatprep.subr.bf16.mxu0 %v468_v5  ;;  %v257_v5 = vld [vmem:[#allocation7 + $0x50] sm:$0xff] }
  0x65   :  { %v510_v7 = vpack.c.bf16 %v258_v6, %v257_v5  ;;  %509 = vmatprep.subr.bf16.mxu1 %v508_v4 }
  0x67   :  { %471 = vmatpush1.bf16.msra.mxu0 %v470_v10  ;;  %511 = vmatpush3.bf16.msra.mxu1 %v510_v7  ;;  %v512_v10 = vpack.c.bf16 %v276_v9, %v275_v8 }
  0x68   :  { %473 = vmatprep.subr.bf16.mxu0 %v472_v11  ;;  %v259_v11 = vld [vmem:[#allocation7 + $0x60] sm:$0xff] }
  0x69   :  { %v514_v13 = vpack.c.bf16 %v260_v12, %v259_v11  ;;  %513 = vmatprep.subr.bf16.mxu1 %v512_v10 }
  0x6b   :  { %475 = vmatpush1.bf16.msra.mxu0 %v474_v16  ;;  %515 = vmatpush3.bf16.msra.mxu1 %v514_v13  ;;  %v516_v16 = vpack.c.bf16 %v278_v15, %v277_v14 }
  0x6c   :  { %477 = vmatprep.subr.bf16.mxu0 %v476_v17  ;;  %v261_v17 = vld [vmem:[#allocation7 + $0x70] sm:$0xff] }
  0x6d   :  { %v518_v19 = vpack.c.bf16 %v262_v18, %v261_v17  ;;  %517 = vmatprep.subr.bf16.mxu1 %v516_v16 }
  0x6f   :  { %479 = vmatpush1.bf16.msra.mxu0 %v478_v22  ;;  %519 = vmatpush3.bf16.msra.mxu1 %v518_v19  ;;  %v134_v22 = vsub.s32 0, %v133_v21 }
  0x70   :  { %481 = vmatprep.subr.bf16.mxu0 %v480_v23  ;;  %v130_v23 = vld [vmem:[%s745_s2] sm:$0x3] }
  0x71   :  { %v135_v25 = vrot.slane %v130_v23, %v134_v22  ;;  %v139_v26 = vrot.slane %v130_v23, %v138_v24 }
  0x73   :  { %483 = vmatpush1.bf16.msra.mxu0 %v482_v28 }
  0x74   :  { %485 = vmatprep.subr.bf16.mxu0 %v484_v29 }
  0x77   :  { %487 = vmatpush1.bf16.msra.mxu0 %v486_v32 }
  0x7a   :  { %207 = vmatmul.mubr.f32.vlgmr.msra.gmra.mrb[0].mxu0 %v62_v33 }
  0x7b   :  { %212 = vmatprep.mubr.f32.mxu0 %v65_v34 }
  0x7e   :  { %213 = vmatmul.mubr.f32.gmra.mrb[2].mxu0 %v64_v35 }
 0x14d   :  { %v208_v27 = vpop.f32.mrb[0].mxu0 }
 0x14e   :  { %v209_v28 = vadd.f32 %v208_v27, %v135_v25  ;;  %v210_v29 = vpop.f32.mrb[1].mxu0 }
 0x14f   :  { %v211_v30 = vadd.f32 %v210_v29, %v139_v26 }
 0x150   :  { %v381_v31 = vmul.f32 -1.442695, %v209_v28 }
 0x151   :  { %v382_v32 = vmul.f32 -1.442695, %v211_v30  ;;  %v214_v33 = vpop.f32.mrb[2].mxu0 }
 0x152   :  { %528 = vpow2.f32 %v381_v31  ;;  %v215_v34 = vadd.f32 %v214_v33, %v135_v25  ;;  %v216_v35 = vpop.f32.mrb[3].mxu0 }
 0x153   :  { %530 = vpow2.f32 %v382_v32  ;;  %v217_v36 = vadd.f32 %v216_v35, %v139_v26 }
 0x154   :  { %v383_v37 = vmul.f32 -1.442695, %v215_v34 }
 0x155   :  { %v384_v38 = vmul.f32 -1.442695, %v217_v36 }
 0x156   :  { %532 = vpow2.f32 %v383_v37 }
 0x157   :  { %534 = vpow2.f32 %v384_v38 }
 0x15c   :  { %v529_v39 = vpop.eup %528 }
 0x15d   :  { %v531_v40 = vpop.eup %530  ;;  %v231_v41 = vadd.f32 1.0, %v529_v39 }
 0x15e   :  { %v232_v42 = vadd.f32 1.0, %v531_v40 }
 0x15f   :  { %536 = vrcp.f32 %v231_v41 }
 0x160   :  { %v533_v43 = vpop.eup %532  ;;  %538 = vrcp.f32 %v232_v42 }
 0x161   :  { %v535_v44 = vpop.eup %534  ;;  %v233_v45 = vadd.f32 1.0, %v533_v43 }
 0x162   :  { %v234_v46 = vadd.f32 1.0, %v535_v44 }
 0x163   :  { %540 = vrcp.f32 %v233_v45 }
 0x164   :  { %542 = vrcp.f32 %v234_v46 }
 0x169   :  { %v537_v47 = vpop.eup %536 }
 0x16a   :  { %v539_v48 = vpop.eup %538  ;;  %v243_v50 = vmul.f32 %v537_v47, %v209_v28 }
 0x16b   :  { %v244_v49 = vmul.f32 %v539_v48, %v211_v30 }
 0x16d   :  { %v541_v51 = vpop.eup %540  ;;  %350 = vmatprep.mubr.f32.mxu1 %v244_v49 }
 0x16e   :  { %v543_v52 = vpop.eup %542  ;;  %351 = vmatmul.mubr.f32.vlgmr.msra.gmra.mrb[0].mxu1 %v243_v50  ;;  %v245_v54 = vmul.f32 %v541_v51, %v215_v34 }
 0x16f   :  { %v246_v53 = vmul.f32 %v543_v52, %v217_v36 }
 0x171   :  { %355 = vmatprep.mubr.f32.mxu1 %v246_v53 }
 0x172   :  { %356 = vmatmul.mubr.f32.gmra.mrb[2].mxu1 %v245_v54 }
 0x241   :  { %v418_v55 = vpop.f32.mrb[0].mxu1 }
 0x242   :  { %v419_v57 = vpop.f32.mrb[1].mxu1 }
 0x243   :  { %v420_v58 = vadd.f32 %v419_v57, %v418_v55 }
 0x245   :  { %v353_v59 = vadd.f32 %v420_v58, %v385_v56  ;;  %v421_v60 = vpop.f32.mrb[2].mxu1 }
 0x246   :  { %v422_v61 = vpop.f32.mrb[3].mxu1 }
 0x247   :  { %361 = vst [vmem:[#allocation8] sm:$0xff] %v353_v59  ;;  %v423_v62 = vadd.f32 %v422_v61, %v421_v60 }
 0x249   :  { %v358_v63 = vadd.f32 %v423_v62, %v385_v56 }
 0x24b   :  { %362 = vst [vmem:[#allocation8 + $0x8] sm:$0xff] %v358_v63 }
 0x24c   :  { %621 = shalt.err (!%p618_p0)
}
 0x24d   :  { %s622_s12 = scalar_lea.hbm %s748_s5, 256 }
 0x24e   :  { %p623_p1 = scmp.ne.s32.totalorder %s748_s5, %s622_s12  ;;  %p626_p2 = scmp.lt.u32.totalorder %s622_s12, %s748_s5 }
 0x250   :  { %p628_p3 = pnand %p626_p2, %p623_p1 }
 0x252   :  { %631 = shalt.err (!%p628_p3)
}
 0x253   :  { %374 = dma.vmem_to_hbm [thread:$0]  %s369_s9, 256, %s748_s5, [#allocation4], %s643_s0, %s643_s0, %s644_s21  }
 0x254   :  { %636 = dma.done.wait [#allocation4], 256  }
 0x255   :  { %637 = vsyncadd [#allocation4], 4294967040 }
 0x256   :  { %378 = vsyncpa [#allocation3], 1 }
 0x257   :  { %379 = vsyncpa [#allocation6], 1 }
 0x258   :  { %380 = vsyncpa [#allocation4], 1 }

</bundles_post_ra>
